<compile_context>
chip_gen: v5e
topology: v5e:2x2
jax: 0.10.0
libtpu: 0.0.40
codegen_flags: <defaults>
</compile_context>

<pallas_src>
import jax
import jax.numpy as jnp
from jax.experimental import pallas as pl
from jax.experimental.pallas import tpu as pltpu


# -----------------------------------------------------------------------------
# Jitted wrapper: im2col prep (fused by XLA) + a single fused pallas_call.
# -----------------------------------------------------------------------------
@jax.jit
def gradcam_forward(x, w_conv, b_conv, w_cls, b_cls):
    """x: NCHW float32 [1, Cin, H, W].  Returns logits [1, num_classes]."""
    N, Cin, H, W = x.shape
    Cout, _, KH, KW = w_conv.shape
    num_classes = w_cls.shape[1]
    f32 = jnp.float32
    HW = H * W
    KK1 = Cin * KH * KW + 1          # receptive field + bias-carrier row (37)
    CP1 = Cout + 1                   # conv outputs + bias-carrier channel (9)
    x = x.astype(f32)

    # ---- im2col (padding=1, stride=1), lane-dense orientation --------------
    # rows = flattened receptive field (index order c*KH*KW + kh*KW + kw,
    # matching the OIHW weight flatten), lanes = H*W spatial positions.
    xp = jnp.pad(x, ((0, 0), (0, 0), (1, 1), (1, 1)))
    cols = []
    for kh in range(KH):
        for kw in range(KW):
            cols.append(xp[0, :, kh:kh + H, kw:kw + W])           # (Cin, H, W)
    patches = jnp.stack(cols, axis=1).reshape(Cin * KH * KW, HW)  # (36, 256)
    # constant-1 bias-carrier row -> conv bias folds into the matmul
    patches_aug = jnp.concatenate([patches, jnp.ones((1, HW), f32)], axis=0)

    # ---- packed weights: one VMEM operand, sublane-aligned sub-blocks -------
    # rows [0, CP1)           : wconv_aug  (CP1, KK1) = [[W_flat, b_conv],
    #                                                    [0 ... 0,     1 ]]
    # rows [CLS_ROW0, +CP1)   : wclsT_scaled (CP1, num_classes)
    #                           = [[w_cls], [b_cls]] / HW   (1/HW pool scale
    #                             folded in; last row pairs with the carrier)
    cls_row0 = ((CP1 + 7) // 8) * 8                 # 16: 8-sublane aligned
    rows = cls_row0 + ((CP1 + 7) // 8) * 8          # 32
    cols_w = max(KK1, num_classes)                  # 37

    w_flat = w_conv.reshape(Cout, Cin * KH * KW).astype(f32)
    wconv_aug = jnp.concatenate([
        jnp.concatenate([w_flat, b_conv.reshape(Cout, 1).astype(f32)], axis=1),
        jnp.concatenate([jnp.zeros((1, Cin * KH * KW), f32),
                         jnp.ones((1, 1), f32)], axis=1),
    ], axis=0)                                                   # (9, 37)

    wclsT_scaled = jnp.concatenate(
        [w_cls.astype(f32), b_cls.reshape(1, num_classes).astype(f32)],
        axis=0) * (1.0 / HW)                                     # (9, 10)

    weights_packed = jnp.zeros((rows, cols_w), f32)
    weights_packed = weights_packed.at[0:CP1, 0:KK1].set(wconv_aug)
    weights_packed = weights_packed.at[cls_row0:cls_row0 + CP1,
                                       0:num_classes].set(wclsT_scaled)

    # ---- fused kernel: 1 MXU dot + ReLU + XLU lane-sum + VPU classifier -----
    def gradcam_kernel(patches_ref, weights_ref, out_ref):
        wconv = weights_ref[0:CP1, 0:KK1]                        # (9, 37)
        wclsT = weights_ref[cls_row0:cls_row0 + CP1, 0:num_classes]  # (9, 10)

        # Conv + bias (folded): (Cout+1, KK1) @ (KK1, HW) -> (Cout+1, HW).
        feat = jnp.dot(wconv, patches_ref[...],
                       preferred_element_type=jnp.float32)
        feat = jnp.maximum(feat, 0.0)                            # ReLU

        # Global pool as a lane reduction (XLU); 1/HW already in wclsT.
        pooled = jnp.sum(feat, axis=-1, keepdims=True)           # (Cout+1, 1)

        # Classifier + bias on VPU/XLU: broadcast-mul + sublane reduce,
        # lane-dense (1, num_classes) output.
        out_ref[...] = jnp.sum(pooled * wclsT, axis=0, keepdims=True)

    vmem = pl.BlockSpec(memory_space=pltpu.MemorySpace.VMEM)
    logits = pl.pallas_call(
        gradcam_kernel,
        out_shape=jax.ShapeDtypeStruct((1, num_classes), f32),
        in_specs=[vmem, vmem],
        out_specs=vmem,
    )(patches_aug, weights_packed)                               # (1, 10)

    return logits


# -----------------------------------------------------------------------------
# Pure-JAX reference (for a correctness check).
# -----------------------------------------------------------------------------
def reference_forward(x, w_conv, b_conv, w_cls, b_cls):
    feat = jax.lax.conv_general_dilated(
        x, w_conv, window_strides=(1, 1), padding="SAME",
        dimension_numbers=("NCHW", "OIHW", "NCHW"))
    feat = feat + b_conv.reshape(1, -1, 1, 1)
    feat = jnp.maximum(feat, 0.0)
    pooled = feat.mean(axis=(2, 3)).reshape(1, -1)
    return pooled @ w_cls + b_cls.reshape(1, -1)


if __name__ == "__main__":
    key = jax.random.PRNGKey(0)
    k_x, k_wc, k_bc, k_wl, k_bl = jax.random.split(key, 5)

    N, Cin, H, W = 1, 4, 16, 16          # x.view((1, -1)) => batch 1
    Cout, KH, KW = 8, 3, 3
    num_classes = 10

    x = jax.random.normal(k_x, (N, Cin, H, W), dtype=jnp.float32)
    w_conv = jax.random.normal(k_wc, (Cout, Cin, KH, KW), dtype=jnp.float32) * 0.1
    b_conv = jax.random.normal(k_bc, (Cout,), dtype=jnp.float32) * 0.1
    w_cls = jax.random.normal(k_wl, (Cout, num_classes), dtype=jnp.float32) * 0.1
    b_cls = jax.random.normal(k_bl, (num_classes,), dtype=jnp.float32) * 0.1

    logits = gradcam_forward(x, w_conv, b_conv, w_cls, b_cls)
    logits = jax.block_until_ready(logits)

    ref = reference_forward(x, w_conv, b_conv, w_cls, b_cls)
    assert logits.shape == (1, num_classes)
    assert jnp.allclose(logits, ref, rtol=1e-4, atol=1e-4), (logits, ref)

    print("KERNEL_OK")
</pallas_src>

<mosaic_0001>
module attributes {stable_mosaic.version = 11 : i64} {
  func.func @gradcam_kernel(%arg0: memref<37x256xf32, #tpu.memory_space<vmem>>, %arg1: memref<32x37xf32, #tpu.memory_space<vmem>>, %arg2: memref<1x10xf32, #tpu.memory_space<vmem>>) attributes {dimension_semantics = [], scalar_prefetch = 0 : i64, scratch_operands = 0 : i64, tpu.core_type = #tpu.core_type<tc>} {
    %c0 = arith.constant 0 : index
    %c0_0 = arith.constant 0 : index
    %0 = vector.load %arg1[%c0, %c0_0] : memref<32x37xf32, #tpu.memory_space<vmem>>, vector<9x37xf32>
    %c16 = arith.constant 16 : index
    %c0_1 = arith.constant 0 : index
    %1 = vector.load %arg1[%c16, %c0_1] : memref<32x37xf32, #tpu.memory_space<vmem>>, vector<9x10xf32>
    %c0_2 = arith.constant 0 : index
    %c0_3 = arith.constant 0 : index
    %2 = vector.load %arg0[%c0_2, %c0_3] : memref<37x256xf32, #tpu.memory_space<vmem>>, vector<37x256xf32>
    %cst = arith.constant dense<0.000000e+00> : vector<9x256xf32>
    %3 = tpu.matmul %0, %2, %cst {dimension_numbers = #tpu.dot_dimension_numbers<[1], [0], [0], [1], [0, 0, 1, 1], [], []>} : vector<9x37xf32>, vector<37x256xf32>, vector<9x256xf32> -> vector<9x256xf32>
    %cst_4 = arith.constant 0.000000e+00 : f32
    %4 = vector.broadcast %cst_4 : f32 to vector<9x256xf32>
    %5 = arith.maximumf %3, %4 : vector<9x256xf32>
    %cst_5 = arith.constant dense<0.000000e+00> : vector<9xf32>
    %6 = vector.multi_reduction <add>, %5, %cst_5 [1] : vector<9x256xf32> to vector<9xf32>
    %7 = vector.shape_cast %6 : vector<9xf32> to vector<9x1xf32>
    %8 = vector.broadcast %7 : vector<9x1xf32> to vector<9x10xf32>
    %9 = arith.mulf %8, %1 : vector<9x10xf32>
    %cst_6 = arith.constant dense<0.000000e+00> : vector<10xf32>
    %10 = vector.multi_reduction <add>, %9, %cst_6 [0] : vector<9x10xf32> to vector<10xf32>
    %11 = vector.shape_cast %10 : vector<10xf32> to vector<1x10xf32>
    %c0_7 = arith.constant 0 : index
    %c0_8 = arith.constant 0 : index
    %12 = vector.load %arg2[%c0_7, %c0_8] : memref<1x10xf32, #tpu.memory_space<vmem>>, vector<1x10xf32>
    tpu.vector_store %arg2[%c0_7, %c0_8], %11 {strides = array<i32>} : memref<1x10xf32, #tpu.memory_space<vmem>>, vector<1x10xf32>,
    return
  }
}

</mosaic_0001>

<bundles_post_ra>
// kernel: gradcam_forward.1
= control target key start
LH: loop header
LB: loop body
LE: loop exit
PB: predicated region body
PF: predicated region fallthrough
CT: control target
= control target key end

     0   :  { %vm33_vm0 = vcmask 1044480   ;;  %s235_s0 = inlined_call_operand.vmem [shape: f32[37,256], index: 0, kind: input, shape index: {}]   ;;  %s236_s1 = inlined_call_operand.vmem [shape: f32[32,37], index: 1, kind: input, shape index: {}]   ;;  %s237_s2 = inlined_call_operand.hbm [shape: f32[1,10], index: 2, kind: output, shape index: {}]  }
   0x1   :  { %v24_v0 = vld [vmem:[%s235_s0 + $0x40] sm:$0x1f]  ;;  %v25_v1 = vld [vmem:[%s235_s0 + $0x48] sm:$0x1f]  ;;  %v22_v2 = vld [vmem:[%s235_s0 + $0x30] sm:$0xff] }
   0x2   :  { %129 = vmatpush.msk.msra.mxu0 %vm33_vm0, %v24_v0  ;;  %132 = vmatpush.msk.msra.mxu1 %vm33_vm0, %v25_v1  ;;  %v23_v3 = vld [vmem:[%s235_s0 + $0x38] sm:$0xff]  ;;  %v20_v4 = vld [vmem:[%s235_s0 + $0x20] sm:$0xff]  ;;  %v21_v5 = vld [vmem:[%s235_s0 + $0x28] sm:$0xff] }
   0x3   :  { %135 = vmatpush.msk.msra.mxu2 %vm33_vm0, %v24_v0  ;;  %140 = vmatpush.msk.msra.mxu3 %vm33_vm0, %v25_v1  ;;  %v18_v6 = vld [vmem:[%s235_s0 + $0x10] sm:$0xff]  ;;  %v19_v7 = vld [vmem:[%s235_s0 + $0x18] sm:$0xff] }
   0x4   :  { %52 = vmatpush.msra.mxu0 %v22_v2  ;;  %75 = vmatpush.msra.mxu1 %v23_v3 }
   0x5   :  { %136 = vmatpush.msra.mxu2 %v22_v2  ;;  %141 = vmatpush.msra.mxu3 %v23_v3 }
   0x6   :  { %7 = vsyncpa [#allocation3], 0  ;;  %53 = vmatpush.msra.mxu0 %v20_v4  ;;  %76 = vmatpush.msra.mxu1 %v21_v5  ;;  %v16_v8 = vld [vmem:[%s235_s0] sm:$0xff]  ;;  %v17_v9 = vld [vmem:[%s235_s0 + $0x8] sm:$0xff]  ;;  %vm26_vm1 = vcmask 302080   ;;  %vm93_vm2 = vcmask 1040384  }
   0x7   :  { %137 = vmatpush.msra.mxu2 %v20_v4  ;;  %142 = vmatpush.msra.mxu3 %v21_v5  ;;  %v12_v10 = vld [vmem:[%s236_s1] sm:$0xff]  ;;  %v13_v11 = vld [vmem:[%s236_s1 + $0x8] sm:$0x1]  ;;  %v14_v25 = vld [vmem:[%s236_s1 + $0x10] sm:$0xff]  ;;  %vm101_vm3 = vcmask 80896   ;;  %vm103_vm4 = vcmask 73728  }
   0x8   :  { %54 = vmatpush.msra.mxu0 %v18_v6  ;;  %77 = vmatpush.msra.mxu1 %v19_v7  ;;  %v15_v26 = vld [vmem:[%s236_s1 + $0x18] sm:$0x1]  ;;  %s172_s8 = smov [#allocation2]   ;;  %s120_s12 = sshll.u32 %s237_s2, 4  ;;  %s121_s12 = int_to_ptr.hbm [resolvable:$true] %s120_s12 }
   0x9   :  { %138 = vmatpush.msra.mxu2 %v18_v6  ;;  %143 = vmatpush.msra.mxu3 %v19_v7  ;;  %s118_s9 = sshll.u32 %s172_s8, 4  ;;  %s119_s9 = int_to_ptr.vmem [resolvable:$true] %s118_s9 }
   0xa   :  { %55 = vmatpush.msra.mxu0 %v16_v8  ;;  %78 = vmatpush.msra.mxu1 %v17_v9 }
   0xb   :  { %139 = vmatpush.msra.mxu2 %v16_v8  ;;  %130 = vmatmul.msk.f32.vlgmr.msra.gmra.mxu0 %vm26_vm1, %v12_v10 }
   0xc   :  { %144 = vmatpush.msra.mxu3 %v17_v9  ;;  %133 = vmatmul.msk.f32.vlgmr.msra.gmra.mxu1 %vm26_vm1, %v12_v10 }
   0xd   :  { %131 = vmatmul.msk.f32.vlgmr.msra.gmra.mxu2 %vm26_vm1, %v13_v11  ;;  %134 = vmatmul.msk.f32.vlgmr.msra.gmra.mxu3 %vm26_vm1, %v13_v11 }
  0x88   :  { %v57_v12 = vpop.f32.mrf.mxu0 }
  0x89   :  { %v86_v13 = vmax.f32 %v57_v12, 0.0  ;;  %v80_v14 = vpop.f32.mrf.mxu1 }
  0x8a   :  { %v87_v15 = vmax.f32 %v80_v14, 0.0 }
  0x8c   :  { %v90_v16 = vadd.f32 %v87_v15, %v86_v13 }
  0x8e   :  { %91 = vadd.xlane.f32.xlu0 %v90_v16 }
  0x90   :  { %v60_v17 = vpop.f32.mrf.mxu2  ;;  %v83_v18 = vpop.f32.mrf.mxu3 }
  0x91   :  { %v88_v19 = vmax.f32 %v60_v17, 0.0  ;;  %v89_v20 = vmax.f32 %v83_v18, 0.0 }
  0x93   :  { %v94_v21 = vsel %vm93_vm2, %v88_v19, 0.0  ;;  %v95_v22 = vsel %vm93_vm2, %v89_v20, 0.0 }
  0x94   :  { %v96_v23 = vadd.f32 %v95_v22, %v94_v21 }
  0x96   :  { %97 = vadd.xlane.f32.xlu0 %v96_v23 }
 0x101   :  { %v92_v24 = vpop.xlane.xlu0 %91 }
 0x102   :  { %v99_v27 = vmul.f32 %v92_v24, %v14_v25 }
 0x104   :  { %v102_v30 = vsel %vm101_vm3, %v99_v27, 0.0 }
 0x109   :  { %v98_v28 = vpop.xlane.xlu0 %97 }
 0x10a   :  { %v100_v29 = vmul.f32 %v98_v28, %v15_v26 }
 0x10c   :  { %v104_v31 = vsel %vm103_vm4, %v100_v29, 0.0 }
 0x10d   :  { %v105_v32 = vadd.f32 %v104_v31, %v102_v30 }
 0x10f   :  { %v106_v33 = vrot.slane %v105_v32, 4 }
 0x111   :  { %v107_v34 = vadd.f32 %v106_v33, %v105_v32 }
 0x113   :  { %v108_v35 = vrot.slane %v107_v34, 2 }
 0x115   :  { %v109_v36 = vadd.f32 %v108_v35, %v107_v34 }
 0x117   :  { %v110_v37 = vrot.slane %v109_v36, 1 }
 0x119   :  { %v111_v38 = vadd.f32 %v110_v37, %v109_v36 }
 0x11b   :  { %112 = vst.msk [vmem:[#allocation2] sm:$0x1] %vm103_vm4, %v111_v38 }
 0x11c   :  { %123 = dma.vmem_to_hbm [thread:$0]  %s119_s9, 16, %s121_s12, [#allocation3]  }
 0x11d   :  { %170 = dma.done.wait [#allocation3], 16  }
 0x11e   :  { %171 = vsyncadd [#allocation3], 4294967280 }
 0x11f   :  { %128 = vsyncpa [#allocation3], 1 }

</bundles_post_ra>
